<compile_context>
chip_gen: v7x
topology: tpu7x:2x2x1
jax: 0.10.0
libtpu: 0.0.40
codegen_flags: <defaults>
</compile_context>

<pallas_src>
import functools

import jax
import jax.numpy as jnp
from jax.experimental import pallas as pl
from jax.experimental.pallas import tpu as pltpu


def _round_up(x, m):
    return ((x + m - 1) // m) * m


def _conv_tap_kernel(xm_ref, xh_ref, w_ref, b_ref, o_ref, xwin_ref, *,
                     taps, cin, tile_m, halo_m):
    """One (batch, spatial-tile) grid step.

    xm_ref  : (Cp, tile_m)          main flat window of the padded input
    xh_ref  : (Cp, halo_m)          adjacent halo lanes (next aligned chunk)
    w_ref   : (KH*KW, Cout, Cin)    per-tap weights (resident)
    b_ref   : (Cout, 1)             bias, float32 (resident)
    o_ref   : (Cout, tile_m)        output tile (flat, padded row pitch)
    xwin_ref: (Cp, tile_m + halo_m) VMEM scratch = main ++ halo
    """
    # Assemble the contiguous flat window (main block + halo) in VMEM.
    xwin_ref[:, :tile_m] = xm_ref[...]
    xwin_ref[:, tile_m:] = xh_ref[...]

    # KH*KW accumulating MXU matmuls; each tap is a static shifted 2-D slice.
    acc = None
    for j, (c0, off) in enumerate(taps):
        part = jnp.dot(w_ref[j],
                       xwin_ref[c0:c0 + cin, off:off + tile_m],
                       preferred_element_type=jnp.float32)
        acc = part if acc is None else acc + part

    o_ref[...] = (acc + b_ref[...]).astype(o_ref.dtype)


def conv_layer_forward(x, weight, bias, *, kernel_size, stride,
                       compute_dtype=jnp.bfloat16, max_lanes=None):
    """Forward pass matching torch ConvLayer (ReflectionPad2d + Conv2d).

    x      : (N, Cin, H, W)
    weight : (Cout, Cin, KH, KW)   (PyTorch Conv2d layout)
    bias   : (Cout,)
    compute_dtype : dtype of the matmul operands (default bf16; accumulation
        and the bias/cast epilogue stay float32).  Pass jnp.float32 for exact.
    max_lanes : optional cap on the spatial tile width (testing knob).
    returns: (N, Cout, OH, OW) in x.dtype
    """
    n, cin, h, w = x.shape
    cout, cin_w, kh, kw = weight.shape
    assert cin_w == cin and kh == kernel_size and kw == kernel_size
    s = int(stride)
    pad = kernel_size // 2
    cdtype = jnp.dtype(compute_dtype) if compute_dtype is not None else x.dtype
    out_dtype = x.dtype

    # --- glue: cast early, then reflection pad (matches torch ReflectionPad2d).
    xp = x.astype(cdtype)
    if pad > 0:
        xp = jnp.pad(xp, ((0, 0), (0, 0), (pad, pad), (pad, pad)),
                     mode="reflect")
    hp, wp = h + 2 * pad, w + 2 * pad
    oh = (hp - kh) // s + 1
    ow = (wp - kw) // s + 1
    qh = (kh - 1) // s
    qw = (kw - 1) // s
    hph, wph = oh + qh, ow + qw

    # --- glue: space-to-depth for stride>1 so every tap is a unit-stride shift.
    if s == 1:
        xph = xp                            # (N, Cin, Hph, Wph) exactly
        nph_w = 1
    else:
        nph_h, nph_w = min(s, kh), min(s, kw)
        phases = []
        for rh in range(nph_h):
            for rw in range(nph_w):
                p = xp[:, :, rh::s, rw::s][:, :, :hph, :wph]
                dr, dc = hph - p.shape[2], wph - p.shape[3]
                if dr or dc:
                    # Padded rows/cols are never read by valid-output taps.
                    p = jnp.pad(p, ((0, 0), (0, 0), (0, dr), (0, dc)))
                phases.append(p)
        xph = jnp.concatenate(phases, axis=1)   # (N, Cin*nph_h*nph_w, Hph, Wph)
    cp = xph.shape[1]

    # Flatten spatial (free, row-major).  Input and output use the padded row
    # pitch Wph, so conv taps are constant flat offsets; the Qw junk columns of
    # the output are sliced off in glue afterwards.
    m_in = hph * wph
    m_out = oh * wph
    xflat = xph.reshape(n, cp, m_in)

    # Tap table: (channel offset into the phase-stacked Cp axis, flat offset).
    taps = []
    for dh in range(kh):
        for dw in range(kw):
            qh_, rh = divmod(dh, s)
            qw_, rw = divmod(dw, s)
            taps.append(((rh * nph_w + rw) * cin, qh_ * wph + qw_))
    max_off = max(off for _, off in taps)

    # Per-tap weights (KH*KW, Cout, Cin) and bias (resident, tiny).
    w_taps = jnp.transpose(weight, (2, 3, 0, 1)).reshape(kh * kw, cout, cin)
    w_taps = w_taps.astype(cdtype)
    b2d = bias.reshape(cout, 1).astype(jnp.float32)

    # --- tile sizing: VMEM-budgeted per generation (v5e/v6e 128 MiB, v7x 64). -
    in_isz = jnp.dtype(cdtype).itemsize
    out_isz = jnp.dtype(out_dtype).itemsize
    bh = max(128, _round_up(max(max_off, 1), 128))      # halo block (lanes)
    try:
        phys_vmem = int(pltpu.get_tpu_info().vmem_capacity_bytes)
    except Exception:
        phys_vmem = 64 * 1024 * 1024                    # conservative fallback
    budget = max(int(phys_vmem * 0.4), 4 << 20)
    fixed = 3 * cp * bh * in_isz + int(w_taps.size) * in_isz + 8 * cout
    # dbl-buffered main + scratch + tap temp (~cp) + dbl-buffered out + f32 acc.
    per_lane = 4 * cp * in_isz + 2 * cout * out_isz + 4 * cout
    tile_m = max((budget - fixed) // per_lane, bh)
    tile_m = min(tile_m, 8192)                          # per-step amortization cap
    if max_lanes is not None:
        tile_m = min(tile_m, int(max_lanes))
    tile_m = min(tile_m, _round_up(m_out, bh))          # never exceed the work
    if n == 1 and m_out > bh:
        # v7x megacore: keep >=2 spatial tiles so both TensorCores get work.
        tile_m = min(tile_m, _round_up(-(-m_out // 2), bh))
    tile_m = max(bh, (tile_m // bh) * bh)               # multiple of halo block
    n_tiles = pl.cdiv(m_out, tile_m)
    bpt = tile_m // bh                                  # halo blocks per tile
    last_halo_block = max((m_in - 1) // bh, 0)

    kernel = functools.partial(_conv_tap_kernel, taps=tuple(taps), cin=cin,
                               tile_m=tile_m, halo_m=bh)

    def main_map(b, t):
        return (b, 0, t)

    def halo_map(b, t):
        # Adjacent bh-lane chunk right after the main block; clamp so the block
        # is never fully out of bounds (only ever clamped when its data could
        # not feed any valid output anyway).
        return (b, 0, jnp.minimum((t + 1) * bpt, last_halo_block))

    out_pad = pl.pallas_call(
        kernel,
        out_shape=jax.ShapeDtypeStruct((n, cout, m_out), out_dtype),
        grid_spec=pltpu.PrefetchScalarGridSpec(
            num_scalar_prefetch=0,
            grid=(n, n_tiles),
            in_specs=[
                pl.BlockSpec((None, cp, tile_m), main_map),
                pl.BlockSpec((None, cp, bh), halo_map),
                pl.BlockSpec((kh * kw, cout, cin), lambda b, t: (0, 0, 0)),
                pl.BlockSpec((cout, 1), lambda b, t: (0, 0)),
            ],
            out_specs=pl.BlockSpec((None, cout, tile_m), main_map),
            scratch_shapes=[pltpu.VMEM((cp, tile_m + bh), cdtype)],
        ),
        compiler_params=pltpu.CompilerParams(
            dimension_semantics=("parallel", "parallel"),
            vmem_limit_bytes=int(min(phys_vmem * 3 // 4, 112 * (1 << 20)))),
    )(xflat, xflat, w_taps, b2d)

    # Drop the Qw junk columns introduced by the padded row pitch (glue slice;
    # small compared to the removed im2col round-trip).
    out = out_pad.reshape(n, cout, oh, wph)[:, :, :, :ow]
    return out


def _reference(x, weight, bias, kernel_size, stride):
    pad = kernel_size // 2
    xp = x
    if pad > 0:
        xp = jnp.pad(x, ((0, 0), (0, 0), (pad, pad), (pad, pad)),
                     mode="reflect")
    ref = jax.lax.conv_general_dilated(
        xp, weight, window_strides=(stride, stride), padding="VALID",
        dimension_numbers=("NCHW", "OIHW", "NCHW"))
    return ref + bias.reshape(1, -1, 1, 1)


if __name__ == "__main__":
    # Small shapes consistent with the module: N=2, Cin=4, H=W=16,
    # Cout=8, kernel_size=3, stride=2.
    N, CIN, H, W = 2, 4, 16, 16
    COUT, KS, STRIDE = 8, 3, 2

    key = jax.random.PRNGKey(0)
    kx, kw_, kb = jax.random.split(key, 3)
    x = jax.random.normal(kx, (N, CIN, H, W), dtype=jnp.float32)
    weight = 0.1 * jax.random.normal(kw_, (COUT, CIN, KS, KS), dtype=jnp.float32)
    bias = 0.1 * jax.random.normal(kb, (COUT,), dtype=jnp.float32)

    # 1) Module configuration (kernel 3, stride 2), exact f32 compute.
    out = conv_layer_forward(x, weight, bias, kernel_size=KS, stride=STRIDE,
                             compute_dtype=jnp.float32)
    out = jax.block_until_ready(out)
    ref = _reference(x, weight, bias, KS, STRIDE)
    assert out.shape == ref.shape
    assert jnp.allclose(out, ref, atol=1e-4, rtol=1e-4)

    # 2) Stride-1 path (no space-to-depth), exact f32 compute.
    out1 = conv_layer_forward(x, weight, bias, kernel_size=KS, stride=1,
                              compute_dtype=jnp.float32)
    jax.block_until_ready(out1)
    ref1 = _reference(x, weight, bias, KS, 1)
    assert jnp.allclose(out1, ref1, atol=1e-4, rtol=1e-4)

    # 3) Multi-tile case: forces several spatial tiles, a ragged last tile and
    #    real halo use (single batch also exercises the two-tile megacore split).
    x2 = jax.random.normal(jax.random.PRNGKey(1), (1, CIN, 32, 32),
                           dtype=jnp.float32)
    out2 = conv_layer_forward(x2, weight, bias, kernel_size=KS, stride=1,
                              compute_dtype=jnp.float32, max_lanes=256)
    jax.block_until_ready(out2)
    ref2 = _reference(x2, weight, bias, KS, 1)
    assert jnp.allclose(out2, ref2, atol=1e-4, rtol=1e-4)

    # 4) Default bf16 compute path (halves HBM traffic on v6e/v7x); looser
    #    tolerance is expected bf16 precision loss, not a bug.
    outb = conv_layer_forward(x, weight, bias, kernel_size=KS, stride=STRIDE)
    jax.block_until_ready(outb)
    assert jnp.allclose(outb, ref, atol=5e-2, rtol=5e-2)

    print("KERNEL_OK")
</pallas_src>

<mosaic_0001>
module attributes {stable_mosaic.version = 11 : i64} {
  func.func @_conv_tap_kernel(%arg0: i32, %arg1: i32, %arg2: memref<1x16x128xf32, #tpu.memory_space<vmem>>, %arg3: memref<1x16x128xf32, #tpu.memory_space<vmem>>, %arg4: memref<9x8x4xf32, #tpu.memory_space<vmem>>, %arg5: memref<8x1xf32, #tpu.memory_space<vmem>>, %arg6: memref<1x8x128xf32, #tpu.memory_space<vmem>>, %arg7: memref<16x256xf32, #tpu.memory_space<vmem>>) attributes {dimension_semantics = [#tpu.dimension_semantics<parallel>, #tpu.dimension_semantics<parallel>], iteration_bounds = array<i64: 2, 1>, scalar_prefetch = 0 : i64, scratch_operands = 1 : i64, tpu.core_type = #tpu.core_type<tc>, window_params = [{transform_indices = @transform_0, window_bounds = array<i64: 1, 16, 128>}, {transform_indices = @transform_1, window_bounds = array<i64: 1, 16, 128>}, {pipeline_mode = #tpu.pipeline_mode<synchronous>, transform_indices = @transform_2, window_bounds = array<i64: 9, 8, 4>}, {pipeline_mode = #tpu.pipeline_mode<synchronous>, transform_indices = @transform_3, window_bounds = array<i64: 8, 1>}, {transform_indices = @transform_4, window_bounds = array<i64: 1, 8, 128>}]} {
    %c0 = arith.constant 0 : index
    %c0_0 = arith.constant 0 : index
    %c0_1 = arith.constant 0 : index
    %0 = vector.load %arg2[%c0, %c0_0, %c0_1] : memref<1x16x128xf32, #tpu.memory_space<vmem>>, vector<1x16x128xf32>
    %1 = vector.shape_cast %0 : vector<1x16x128xf32> to vector<16x128xf32>
    %c0_2 = arith.constant 0 : index
    %c0_3 = arith.constant 0 : index
    %2 = vector.load %arg7[%c0_2, %c0_3] : memref<16x256xf32, #tpu.memory_space<vmem>>, vector<16x128xf32>
    tpu.vector_store %arg7[%c0_2, %c0_3], %1 {strides = array<i32>} : memref<16x256xf32, #tpu.memory_space<vmem>>, vector<16x128xf32>,
    %c0_4 = arith.constant 0 : index
    %c0_5 = arith.constant 0 : index
    %c0_6 = arith.constant 0 : index
    %3 = vector.load %arg3[%c0_4, %c0_5, %c0_6] : memref<1x16x128xf32, #tpu.memory_space<vmem>>, vector<1x16x128xf32>
    %4 = vector.shape_cast %3 : vector<1x16x128xf32> to vector<16x128xf32>
    %c0_7 = arith.constant 0 : index
    %c128 = arith.constant 128 : index
    %5 = vector.load %arg7[%c0_7, %c128] : memref<16x256xf32, #tpu.memory_space<vmem>>, vector<16x128xf32>
    tpu.vector_store %arg7[%c0_7, %c128], %4 {strides = array<i32>} : memref<16x256xf32, #tpu.memory_space<vmem>>, vector<16x128xf32>,
    %c0_8 = arith.constant 0 : index
    %c0_9 = arith.constant 0 : index
    %c0_10 = arith.constant 0 : index
    %6 = vector.load %arg4[%c0_8, %c0_9, %c0_10] : memref<9x8x4xf32, #tpu.memory_space<vmem>>, vector<1x8x4xf32>
    %7 = vector.shape_cast %6 : vector<1x8x4xf32> to vector<8x4xf32>
    %c0_11 = arith.constant 0 : index
    %c0_12 = arith.constant 0 : index
    %8 = vector.load %arg7[%c0_11, %c0_12] : memref<16x256xf32, #tpu.memory_space<vmem>>, vector<4x128xf32>
    %cst = arith.constant dense<0.000000e+00> : vector<8x128xf32>
    %9 = tpu.matmul %7, %8, %cst {dimension_numbers = #tpu.dot_dimension_numbers<[1], [0], [0], [1], [0, 0, 1, 1], [], []>} : vector<8x4xf32>, vector<4x128xf32>, vector<8x128xf32> -> vector<8x128xf32>
    %c1 = arith.constant 1 : index
    %c0_13 = arith.constant 0 : index
    %c0_14 = arith.constant 0 : index
    %10 = vector.load %arg4[%c1, %c0_13, %c0_14] : memref<9x8x4xf32, #tpu.memory_space<vmem>>, vector<1x8x4xf32>
    %11 = vector.shape_cast %10 : vector<1x8x4xf32> to vector<8x4xf32>
    %c4 = arith.constant 4 : index
    %c0_15 = arith.constant 0 : index
    %12 = vector.load %arg7[%c4, %c0_15] : memref<16x256xf32, #tpu.memory_space<vmem>>, vector<4x128xf32>
    %cst_16 = arith.constant dense<0.000000e+00> : vector<8x128xf32>
    %13 = tpu.matmul %11, %12, %cst_16 {dimension_numbers = #tpu.dot_dimension_numbers<[1], [0], [0], [1], [0, 0, 1, 1], [], []>} : vector<8x4xf32>, vector<4x128xf32>, vector<8x128xf32> -> vector<8x128xf32>
    %14 = arith.addf %9, %13 : vector<8x128xf32>
    %c2 = arith.constant 2 : index
    %c0_17 = arith.constant 0 : index
    %c0_18 = arith.constant 0 : index
    %15 = vector.load %arg4[%c2, %c0_17, %c0_18] : memref<9x8x4xf32, #tpu.memory_space<vmem>>, vector<1x8x4xf32>
    %16 = vector.shape_cast %15 : vector<1x8x4xf32> to vector<8x4xf32>
    %c0_19 = arith.constant 0 : index
    %c1_20 = arith.constant 1 : index
    %17 = vector.load %arg7[%c0_19, %c1_20] : memref<16x256xf32, #tpu.memory_space<vmem>>, vector<4x128xf32>
    %cst_21 = arith.constant dense<0.000000e+00> : vector<8x128xf32>
    %18 = tpu.matmul %16, %17, %cst_21 {dimension_numbers = #tpu.dot_dimension_numbers<[1], [0], [0], [1], [0, 0, 1, 1], [], []>} : vector<8x4xf32>, vector<4x128xf32>, vector<8x128xf32> -> vector<8x128xf32>
    %19 = arith.addf %14, %18 : vector<8x128xf32>
    %c3 = arith.constant 3 : index
    %c0_22 = arith.constant 0 : index
    %c0_23 = arith.constant 0 : index
    %20 = vector.load %arg4[%c3, %c0_22, %c0_23] : memref<9x8x4xf32, #tpu.memory_space<vmem>>, vector<1x8x4xf32>
    %21 = vector.shape_cast %20 : vector<1x8x4xf32> to vector<8x4xf32>
    %c8 = arith.constant 8 : index
    %c0_24 = arith.constant 0 : index
    %22 = vector.load %arg7[%c8, %c0_24] : memref<16x256xf32, #tpu.memory_space<vmem>>, vector<4x128xf32>
    %cst_25 = arith.constant dense<0.000000e+00> : vector<8x128xf32>
    %23 = tpu.matmul %21, %22, %cst_25 {dimension_numbers = #tpu.dot_dimension_numbers<[1], [0], [0], [1], [0, 0, 1, 1], [], []>} : vector<8x4xf32>, vector<4x128xf32>, vector<8x128xf32> -> vector<8x128xf32>
    %24 = arith.addf %19, %23 : vector<8x128xf32>
    %c4_26 = arith.constant 4 : index
    %c0_27 = arith.constant 0 : index
    %c0_28 = arith.constant 0 : index
    %25 = vector.load %arg4[%c4_26, %c0_27, %c0_28] : memref<9x8x4xf32, #tpu.memory_space<vmem>>, vector<1x8x4xf32>
    %26 = vector.shape_cast %25 : vector<1x8x4xf32> to vector<8x4xf32>
    %c12 = arith.constant 12 : index
    %c0_29 = arith.constant 0 : index
    %27 = vector.load %arg7[%c12, %c0_29] : memref<16x256xf32, #tpu.memory_space<vmem>>, vector<4x128xf32>
    %cst_30 = arith.constant dense<0.000000e+00> : vector<8x128xf32>
    %28 = tpu.matmul %26, %27, %cst_30 {dimension_numbers = #tpu.dot_dimension_numbers<[1], [0], [0], [1], [0, 0, 1, 1], [], []>} : vector<8x4xf32>, vector<4x128xf32>, vector<8x128xf32> -> vector<8x128xf32>
    %29 = arith.addf %24, %28 : vector<8x128xf32>
    %c5 = arith.constant 5 : index
    %c0_31 = arith.constant 0 : index
    %c0_32 = arith.constant 0 : index
    %30 = vector.load %arg4[%c5, %c0_31, %c0_32] : memref<9x8x4xf32, #tpu.memory_space<vmem>>, vector<1x8x4xf32>
    %31 = vector.shape_cast %30 : vector<1x8x4xf32> to vector<8x4xf32>
    %c8_33 = arith.constant 8 : index
    %c1_34 = arith.constant 1 : index
    %32 = vector.load %arg7[%c8_33, %c1_34] : memref<16x256xf32, #tpu.memory_space<vmem>>, vector<4x128xf32>
    %cst_35 = arith.constant dense<0.000000e+00> : vector<8x128xf32>
    %33 = tpu.matmul %31, %32, %cst_35 {dimension_numbers = #tpu.dot_dimension_numbers<[1], [0], [0], [1], [0, 0, 1, 1], [], []>} : vector<8x4xf32>, vector<4x128xf32>, vector<8x128xf32> -> vector<8x128xf32>
    %34 = arith.addf %29, %33 : vector<8x128xf32>
    %c6 = arith.constant 6 : index
    %c0_36 = arith.constant 0 : index
    %c0_37 = arith.constant 0 : index
    %35 = vector.load %arg4[%c6, %c0_36, %c0_37] : memref<9x8x4xf32, #tpu.memory_space<vmem>>, vector<1x8x4xf32>
    %36 = vector.shape_cast %35 : vector<1x8x4xf32> to vector<8x4xf32>
    %c0_38 = arith.constant 0 : index
    %c9 = arith.constant 9 : index
    %37 = vector.load %arg7[%c0_38, %c9] : memref<16x256xf32, #tpu.memory_space<vmem>>, vector<4x128xf32>
    %cst_39 = arith.constant dense<0.000000e+00> : vector<8x128xf32>
    %38 = tpu.matmul %36, %37, %cst_39 {dimension_numbers = #tpu.dot_dimension_numbers<[1], [0], [0], [1], [0, 0, 1, 1], [], []>} : vector<8x4xf32>, vector<4x128xf32>, vector<8x128xf32> -> vector<8x128xf32>
    %39 = arith.addf %34, %38 : vector<8x128xf32>
    %c7 = arith.constant 7 : index
    %c0_40 = arith.constant 0 : index
    %c0_41 = arith.constant 0 : index
    %40 = vector.load %arg4[%c7, %c0_40, %c0_41] : memref<9x8x4xf32, #tpu.memory_space<vmem>>, vector<1x8x4xf32>
    %41 = vector.shape_cast %40 : vector<1x8x4xf32> to vector<8x4xf32>
    %c4_42 = arith.constant 4 : index
    %c9_43 = arith.constant 9 : index
    %42 = vector.load %arg7[%c4_42, %c9_43] : memref<16x256xf32, #tpu.memory_space<vmem>>, vector<4x128xf32>
    %cst_44 = arith.constant dense<0.000000e+00> : vector<8x128xf32>
    %43 = tpu.matmul %41, %42, %cst_44 {dimension_numbers = #tpu.dot_dimension_numbers<[1], [0], [0], [1], [0, 0, 1, 1], [], []>} : vector<8x4xf32>, vector<4x128xf32>, vector<8x128xf32> -> vector<8x128xf32>
    %44 = arith.addf %39, %43 : vector<8x128xf32>
    %c8_45 = arith.constant 8 : index
    %c0_46 = arith.constant 0 : index
    %c0_47 = arith.constant 0 : index
    %45 = vector.load %arg4[%c8_45, %c0_46, %c0_47] : memref<9x8x4xf32, #tpu.memory_space<vmem>>, vector<1x8x4xf32>
    %46 = vector.shape_cast %45 : vector<1x8x4xf32> to vector<8x4xf32>
    %c0_48 = arith.constant 0 : index
    %c10 = arith.constant 10 : index
    %47 = vector.load %arg7[%c0_48, %c10] : memref<16x256xf32, #tpu.memory_space<vmem>>, vector<4x128xf32>
    %cst_49 = arith.constant dense<0.000000e+00> : vector<8x128xf32>
    %48 = tpu.matmul %46, %47, %cst_49 {dimension_numbers = #tpu.dot_dimension_numbers<[1], [0], [0], [1], [0, 0, 1, 1], [], []>} : vector<8x4xf32>, vector<4x128xf32>, vector<8x128xf32> -> vector<8x128xf32>
    %49 = arith.addf %44, %48 : vector<8x128xf32>
    %c0_50 = arith.constant 0 : index
    %c0_51 = arith.constant 0 : index
    %50 = vector.load %arg5[%c0_50, %c0_51] : memref<8x1xf32, #tpu.memory_space<vmem>>, vector<8x1xf32>
    %51 = vector.broadcast %50 : vector<8x1xf32> to vector<8x128xf32>
    %52 = arith.addf %49, %51 : vector<8x128xf32>
    %c0_52 = arith.constant 0 : index
    %c0_53 = arith.constant 0 : index
    %c0_54 = arith.constant 0 : index
    %53 = vector.load %arg6[%c0_52, %c0_53, %c0_54] : memref<1x8x128xf32, #tpu.memory_space<vmem>>, vector<1x8x128xf32>
    %54 = vector.shape_cast %53 : vector<1x8x128xf32> to vector<8x128xf32>
    %55 = vector.shape_cast %52 : vector<8x128xf32> to vector<1x8x128xf32>
    tpu.vector_store %arg6[%c0_52, %c0_53, %c0_54], %55 {strides = array<i32>} : memref<1x8x128xf32, #tpu.memory_space<vmem>>, vector<1x8x128xf32>,
    return
  }
  func.func @transform_0(%arg0: i32, %arg1: i32) -> (i32, i32, i32) {
    %c0_i32 = arith.constant 0 : i32
    %c0_i32_0 = arith.constant 0 : i32
    return %arg0, %c0_i32, %arg1 : i32, i32, i32
  }
  func.func @transform_1(%arg0: i32, %arg1: i32) -> (i32, i32, i32) {
    %c1_i32 = arith.constant 1 : i32
    %0 = arith.addi %arg1, %c1_i32 : i32
    %c1_i32_0 = arith.constant 1 : i32
    %1 = arith.muli %0, %c1_i32_0 : i32
    %c0_i32 = arith.constant 0 : i32
    %2 = arith.minsi %1, %c0_i32 : i32
    %c0_i32_1 = arith.constant 0 : i32
    %c0_i32_2 = arith.constant 0 : i32
    return %arg0, %c0_i32_1, %2 : i32, i32, i32
  }
  func.func @transform_2(%arg0: i32, %arg1: i32) -> (i32, i32, i32) {
    %c0_i32 = arith.constant 0 : i32
    %c0_i32_0 = arith.constant 0 : i32
    %c0_i32_1 = arith.constant 0 : i32
    %c0_i32_2 = arith.constant 0 : i32
    return %c0_i32, %c0_i32_0, %c0_i32_1 : i32, i32, i32
  }
  func.func @transform_3(%arg0: i32, %arg1: i32) -> (i32, i32) {
    %c0_i32 = arith.constant 0 : i32
    %c0_i32_0 = arith.constant 0 : i32
    %c0_i32_1 = arith.constant 0 : i32
    return %c0_i32, %c0_i32_0 : i32, i32
  }
  func.func @transform_4(%arg0: i32, %arg1: i32) -> (i32, i32, i32) {
    %c0_i32 = arith.constant 0 : i32
    %c0_i32_0 = arith.constant 0 : i32
    return %arg0, %c0_i32, %arg1 : i32, i32, i32
  }
}

</mosaic_0001>

<bundles_post_ra>
// kernel: tpu_custom_call.1
= control target key start
LH: loop header
LB: loop body
LE: loop exit
PB: predicated region body
PF: predicated region fallthrough
CT: control target
= control target key end

     0   :  { %9 = vsyncpa [#allocation4], 0  ;;  %s1620_s0 = inlined_call_operand.vmem [shape: f32[2,16,81], index: 0, kind: input, shape index: {}]   ;;  %s1621_s1 = inlined_call_operand.vmem [shape: f32[2,16,81], index: 1, kind: input, shape index: {}]   ;;  %s1622_s2 = inlined_call_operand.vmem [shape: f32[9,8,4], index: 2, kind: input, shape index: {}]   ;;  %s1623_s3 = inlined_call_operand.vmem [shape: f32[8,1], index: 3, kind: input, shape index: {}]   ;;  %s1624_s4 = inlined_call_operand.hbm [shape: f32[2,8,72], index: 4, kind: output, shape index: {}]  }
   0x1   :  { %11 = vsyncpa [#allocation4 + $0x1], 0  ;;  %s1428_s15 = smov 0   ;;  %s1430_s16 = smov 0  }
   0x2   :  { %s1432_s17 = smov 0   ;;  %s1434_s18 = smov 0  }
   0x3   :  { %s1436_s19 = smov 0   ;;  %s1438_s20 = smov 0  }
   0x4 LB: > { %s1149_s21 = sadd.s32 4294967295, %s1394_s20   ;;  %s1150_s22 = sadd.s32 4294967294, %s1394_s20   ;;  %s1394_s20 = sphi %s1438_s20, %s17_s20   ;;  %s1390_s19 = sphi %s1436_s19, %s1631_s19   ;;  %s1386_s18 = sphi %s1434_s18, %s1630_s18   ;;  %s1382_s17 = sphi %s1432_s17, %s1629_s17   ;;  %s1378_s16 = sphi %s1430_s16, %s1628_s16   ;;  %s1374_s15 = sphi %s1428_s15, %s1627_s15  }
   0x5   : > { %s29_s23 = sadd.s32 1, %s1390_s19  ;;  %s142_s24 = sadd.s32 1, %s1382_s17 }
   0x6   : > { %p31_p0 = scmp.ge.s32.totalorder %s29_s23, 2  ;;  %p152_p1 = scmp.ne.s32.totalorder %s1382_s17, %s1378_s16 }
   0x7   : > { %p153_p2 = scmp.eq.s32.totalorder %s1149_s21, 1  ;;  %p158_p3 = scmp.ne.s32.totalorder %s1378_s16, %s1374_s15 }
   0x8   : > { %s1633_s23 = smov (%p31_p0, %s29_s23), 0  ;;  %p159_p5 = scmp.eq.s32.totalorder %s1150_s22, 1 }
   0x9   : > { %p1468_p4 = por %p153_p2, %p152_p1  ;;  %s137_s26 = ssub.s32 %s1390_s19, %s1633_s23 }
   0xa   : > { %p1153_p6 = scmp.ge.s32.totalorder %s1394_s20, 1  ;;  %p140_p7 = scmp.eq.s32.totalorder %s137_s26, 0 }
   0xb   : > { %p1475_p8 = por %p159_p5, %p158_p3  ;;  %p211_p9 = scmp.lt.s32.totalorder %s1394_s20, 3 }
   0xc   : > { %s1481_s28 = scalar_select %p140_p7, %s1382_s17, %s142_s24  }
   0xd   : > { %p212_p10 = pnand %p1153_p6, %p211_p9 }
   0xe   : > { %p251_p11 = scmp.lt.s32.totalorder (!%p212_p10), %s1386_s18, 1  ;;  %v1396_v0 = vmov (!%p212_p10), 0.0   ;;  %vm1397_vm0 = vmmov (!%p212_p10), 0   ;;  %vm292_vm1 = vcmask (!%p212_p10), 1043456   ;;  %s1398_s11 = smov (!%p212_p10), 127   ;;  %v281_v8 = vld [vmem:[%s1622_s2] sm:$0xff] (!%p212_p10) }
   0xf   : > { %215 = sbr.rel (%p212_p10) target bundleno = 398 (0x18e), region = 36  ;;  %1214 = vmatprep.subr.mxu1 (!%p212_p10), %v1396_v0  ;;  %1209 = vmatprep.subr.mxu0 (!%p212_p10), %v1396_v0  ;;  %vm288_vm2 = vcmask (!%p212_p10), 31744   ;;  %v1159_v14 = vld [vmem:[%s1622_s2 + $0x8] sm:$0xff] (!%p212_p10)  ;;  %v1167_v17 = vld [vmem:[%s1622_s2 + $0x18] sm:$0xff] (!%p212_p10)  ;;  %s1399_s26 = smov (!%p212_p10), 119   ;;  %v1400_v20 = vmov (!%p212_p10), 0  }
  0x10   : > { %1216 = vmatprep.mubr.msk.f32.mxu1 (!%p212_p10), %vm1397_vm0, %v1396_v0  ;;  %1211 = vmatprep.mubr.msk.f32.mxu0 (!%p212_p10), %vm1397_vm0, %v1396_v0  ;;  %v1034_v21 = vld [vmem:[%s1623_s3] sm:$0xff] (!%p212_p10)  ;;  %vm451_vm3 = vcmask (!%p212_p10), 1039360   ;;  %v1164_v27 = vld [vmem:[%s1622_s2 + $0x10] sm:$0xff] (!%p212_p10)  ;;  %vm783_vm4 = vcmask (!%p212_p10), 973824   ;;  %v1173_v31 = vld [vmem:[%s1622_s2 + $0x28] sm:$0xff] (!%p212_p10)  ;;  %vm956_vm5 = vcmask (!%p212_p10), 965632  }
  0x11   : > { %1315 = vset.pattern.permute.xlu0 (!%p212_p10), %v1400_v20  ;;  %v1170_v34 = vld [vmem:[%s1622_s2 + $0x20] sm:$0xff] (!%p212_p10)  ;;  %v1176_v38 = vld [vmem:[%s1622_s2 + $0x30] sm:$0xff] (!%p212_p10)  ;;  %v1179_v39 = vld [vmem:[%s1622_s2 + $0x38] sm:$0xff] (!%p212_p10) }
  0x12   : > { %v1182_v43 = vld [vmem:[%s1622_s2 + $0x40] sm:$0xff] (!%p212_p10) }
  0x16   : > { %s252_s29 = scalar_select %p251_p11, %s1386_s18, 1 }
  0x18   : > { %s1189_s30 = sshll.u32 %s252_s29, 4  ;;  %s1401_s29 = smov 118  }
  0x19   : > { %s258_s7 = scalar_lea.vmem %s1620_s0, %s1189_s30  ;;  %s269_s10 = scalar_lea.vmem %s1621_s1, %s1189_s30 }
  0x1a   : > { %v274_v1 = vld [vmem:[%s258_s7 + $0x8] sm:$0xff]  ;;  %v273_v2 = vld [vmem:[%s258_s7] sm:$0xff]  ;;  %s1186_s30 = sshll.u32 %s1386_s18, 7  ;;  %s1402_s18 = smov [#allocation3]  }
  0x1b   : > { %v278_v3 = vld [vmem:[%s269_s10 + $0x8] sm:$0xff]  ;;  %276 = vst [vmem:[#allocation2 + $0x10] sm:$0xff] %v274_v1  ;;  %275 = vst [vmem:[#allocation2] sm:$0xff] %v273_v2  ;;  %v277_v4 = vld [vmem:[%s269_s10] sm:$0xff]  ;;  %s1573_s9 = scalar_lea.hbm %s1624_s4, %s1186_s30  ;;  %s1320_s12 = sshll.u32 %s1402_s18, 4  ;;  %s1321_s12 = int_to_ptr.vmem [resolvable:$false] %s1320_s12 }
  0x1c   : > { %280 = vst [vmem:[#allocation2 + $0x18] sm:$0xff] %v278_v3  ;;  %279 = vst [vmem:[#allocation2 + $0x8] sm:$0xff] %v277_v4  ;;  %s1322_s13 = scalar_lea.vmem %s1321_s12, 256 }
  0x22   : > { %v692_v5 = vld [vmem:[#allocation2 + $0x10] sm:$0xf]  ;;  %v443_v6 = vld [vmem:[#allocation2] sm:$0xf]  ;;  %v285_v11 = vld [vmem:[#allocation2] sm:$0xf0] }
  0x23   : > { %696 = vrot.lane.b32.xlu1 %v692_v5, %s1398_s11  ;;  %447 = vrot.lane.b32.xlu0 %v443_v6, %s1398_s11  ;;  %v693_v7 = vld [vmem:[#allocation2 + $0x18] sm:$0xf]  ;;  %v444_v9 = vld [vmem:[#allocation2 + $0x8] sm:$0xf]  ;;  %v282_v10 = vld [vmem:[#allocation2] sm:$0xf] }
  0x24   : > { %1215 = vmatpush3.msk.msra.mxu1 %vm292_vm1, %v282_v10  ;;  %v287_v12 = vrot.slane %v285_v11, 4  ;;  %v531_v13 = vld [vmem:[#allocation2 + $0x10] sm:$0xf]  ;;  %v864_v15 = vld [vmem:[#allocation2 + $0x8] sm:$0xf0] }
  0x25   : > { %1217 = vmatmul.mubr.msk.f32.vlgmr.msra.gmra.mrb[0].mxu1 %vm288_vm2, %v281_v8  ;;  %1224 = vmatprep.subr.mxu1 %v1396_v0  ;;  %v863_v16 = vld [vmem:[#allocation2] sm:$0xf0]  ;;  %v868_v18 = vrot.slane %v864_v15, 4  ;;  %v611_v24 = vld [vmem:[#allocation2 + $0x10] sm:$0xf0] }
  0x26   : > { %1210 = vmatpush3.msk.msra.mxu0 %vm292_vm1, %v287_v12  ;;  %1225 = vmatpush3.msk.msra.mxu1 %vm292_vm1, %v531_v13  ;;  %v867_v19 = vrot.slane %v863_v16, 4  ;;  %v613_v28 = vrot.slane %v611_v24, 4 }
  0x27   : > { %698 = vrot.lane.b32.xlu1 %v693_v7, %s1398_s11  ;;  %449 = vrot.lane.b32.xlu0 %v444_v9, %s1398_s11 }
  0x28   : > { %1212 = vmatmul.mubr.msk.f32.vlgmr.msra.gmra.mrb[0].mxu0 %vm288_vm2, %v1159_v14  ;;  %1219 = vmatprep.subr.mxu0 %v1396_v0 }
  0x29   : > { %1226 = vmatprep.mubr.msk.f32.mxu1 %vm1397_vm0, %v1396_v0  ;;  %1234 = vmatprep.subr.mxu1 %v1396_v0 }
  0x2a   : > { %1221 = vmatprep.mubr.msk.f32.mxu0 %vm1397_vm0, %v1396_v0  ;;  %1227 = vmatmul.mubr.msk.f32.vlgmr.msra.gmra.mrb[2].mxu1 %vm288_vm2, %v1167_v17 }
  0x2b   : > { %781 = vrot.lane.b32.xlu1 %v444_v9, %s1399_s26  ;;  %779 = vrot.lane.b32.xlu0 %v443_v6, %s1399_s26 }
  0x2c   : > { %1236 = vmatprep.mubr.msk.f32.mxu1 %vm1397_vm0, %v1396_v0 }
  0x2f   : > { %871 = vrot.lane.b32.xlu1 %v868_v18, %s1399_s26  ;;  %869 = vrot.lane.b32.xlu0 %v867_v19, %s1399_s26  ;;  %s248_s26 = sand.u32 1, %s1378_s16  }
  0x30   : > { %s1043_s10 = scalar_lea.sflag [#allocation4], %s248_s26 }
  0x33   : > { %954 = vrot.lane.b32.xlu1 %v444_v9, %s1401_s29  ;;  %952 = vrot.lane.b32.xlu0 %v443_v6, %s1401_s29  ;;  %s1154_s29 = sshll.u32 %s248_s26, 3 }
  0x34   : > { %s250_s5 = scalar_lea.vmem [#allocation3], %s1154_s29 }
  0x35   : > { %s1057_s6 = sshll.u32 %s250_s5, 4  ;;  %s1575_s6 = int_to_ptr.vmem [resolvable:$true] %s1057_s6 }
  0x36   : > { %s1316_s11 = scalar_lea.vmem %s1575_s6, 128  ;;  %p1323_p1 = scmp.lt.s32.totalorder %s1575_s6, %s1321_s12 }
  0x37   : > { %1037 = vperm.xlu0 %1315, %v1034_v21   ;;  %p1317_p12 = scmp.ne.s32.totalorder %s1575_s6, %s1316_s11  ;;  %p1324_p2 = scmp.lt.s32.totalorder %s1322_s13, %s1316_s11 }
  0x39   : > { %p1318_p13 = pnand %p1317_p12, %p1468_p4  ;;  %p1325_p3 = por %p1324_p2, %p1323_p1 }
  0x3b   : > { %p1319_p0 = pneg %p1318_p13 }
  0x3d   : > { %p1326_p5 = pnand %p1325_p3, %p1319_p0 }
  0x95   : > { %v697_v22 = vpop.permute.xlu1 %696  ;;  %v448_v23 = vpop.permute.xlu0 %447 }
  0x99   : > { %v699_v25 = vpop.permute.xlu1 %698  ;;  %v450_v26 = vpop.permute.xlu0 %449 }
  0x9a   : > { %v700_v29 = vsel %vm451_vm3, %v697_v22, %v699_v25  ;;  %v452_v30 = vsel %vm451_vm3, %v448_v23, %v450_v26 }
  0x9b   : > { %1220 = vmatpush3.msk.msra.mxu0 %vm292_vm1, %v452_v30  ;;  %1235 = vmatpush3.msk.msra.mxu1 %vm292_vm1, %v700_v29 }
  0x9c   : > { %1222 = vmatmul.mubr.msk.f32.vlgmr.msra.gmra.mrb[2].mxu0 %vm288_vm2, %v1164_v27  ;;  %1229 = vmatprep.subr.mxu0 %v1396_v0 }
  0x9d   : > { %v782_v32 = vpop.permute.xlu1 %781  ;;  %v780_v33 = vpop.permute.xlu0 %779  ;;  %1230 = vmatpush3.msk.msra.mxu0 %vm292_vm1, %v613_v28  ;;  %1231 = vmatprep.mubr.msk.f32.mxu0 %vm1397_vm0, %v1396_v0 }
  0x9e   : > { %v784_v35 = vsel %vm783_vm4, %v780_v33, %v782_v32  ;;  %1239 = vmatprep.subr.mxu0 %v1396_v0  ;;  %1244 = vmatprep.subr.mxu1 %v1396_v0 }
  0x9f   : > { %1237 = vmatmul.mubr.msk.f32.vlgmr.msra.gmra.mrb[4].mxu1 %vm288_vm2, %v1173_v31 }
  0xa0   : > { %1232 = vmatmul.mubr.msk.f32.vlgmr.msra.gmra.mrb[4].mxu0 %vm288_vm2, %v1170_v34  ;;  %1246 = vmatprep.mubr.msk.f32.mxu1 %vm1397_vm0, %v1396_v0 }
  0xa1   : > { %1240 = vmatpush3.msk.msra.mxu0 %vm292_vm1, %v784_v35  ;;  %v872_v36 = vpop.permute.xlu1 %871  ;;  %v870_v37 = vpop.permute.xlu0 %869  ;;  %1241 = vmatprep.mubr.msk.f32.mxu0 %vm1397_vm0, %v1396_v0 }
  0xa2   : > { %v873_v40 = vsel %vm783_vm4, %v870_v37, %v872_v36  ;;  %1249 = vmatprep.subr.mxu0 %v1396_v0 }
  0xa3   : > { %1245 = vmatpush3.msk.msra.mxu1 %vm292_vm1, %v873_v40 }
  0xa4   : > { %1242 = vmatmul.mubr.msk.f32.vlgmr.msra.gmra.mrb[6].mxu0 %vm288_vm2, %v1176_v38  ;;  %1247 = vmatmul.mubr.msk.f32.vlgmr.msra.gmra.mrb[6].mxu1 %vm288_vm2, %v1179_v39 }
  0xa5   : > { %v955_v41 = vpop.permute.xlu1 %954  ;;  %v953_v42 = vpop.permute.xlu0 %952  ;;  %1251 = vmatprep.mubr.msk.f32.mxu0 %vm1397_vm0, %v1396_v0 }
  0xa6   : > { %v957_v44 = vsel %vm956_vm5, %v953_v42, %v955_v41 }
  0xa7   : > { %1250 = vmatpush3.msk.msra.mxu0 %vm292_vm1, %v957_v44 }
  0xa8   : > { %1252 = vmatmul.mubr.msk.f32.vlgmr.msra.gmra.mrb[8].mxu0 %vm288_vm2, %v1182_v43 }
  0xb6   : > { %v1038_v5 = vpop.permute.xlu0 %1037 }
  0xf8   : > { %v437_v45 = vpop.f32.mrb[0].mxu1 }
  0xf9   : > { %v1218_v46 = vpop.f32.mrb[1].mxu1 }
  0xfb   : > { %v361_v47 = vpop.f32.mrb[0].mxu0 }
  0xfc   : > { %v1213_v48 = vpop.f32.mrb[1].mxu0  ;;  %v438_v49 = vadd.f32 %v437_v45, %v361_v47 }
  0xfd   : > { %v604_v50 = vpop.f32.mrb[2].mxu1 }
  0xfe   : > { %v1228_v51 = vpop.f32.mrb[3].mxu1 }
 0x16f   : > { %v524_v52 = vpop.f32.mrb[2].mxu0 }
 0x170   : > { %v528_v53 = vadd.f32 %v524_v52, %v438_v49  ;;  %v1223_v54 = vpop.f32.mrb[3].mxu0 }
 0x172   : > { %v608_v55 = vadd.f32 %v604_v50, %v528_v53  ;;  %v772_v56 = vpop.f32.mrb[4].mxu1 }
 0x173   : > { %v685_v57 = vpop.f32.mrb[4].mxu0  ;;  %v1238_v58 = vpop.f32.mrb[5].mxu1 }
 0x174   : > { %v689_v59 = vadd.f32 %v685_v57, %v608_v55  ;;  %v1233_v60 = vpop.f32.mrb[5].mxu0 }
 0x176   : > { %v776_v61 = vadd.f32 %v772_v56, %v689_v59 }
 0x177   : > { %v856_v62 = vpop.f32.mrb[6].mxu0  ;;  %v945_v63 = vpop.f32.mrb[6].mxu1 }
 0x178   : > { %v860_v0 = vadd.f32 %v856_v62, %v776_v61  ;;  %v1243_v1 = vpop.f32.mrb[7].mxu0  ;;  %v1248_v2 = vpop.f32.mrb[7].mxu1 }
 0x17a   : > { %v949_v3 = vadd.f32 %v945_v63, %v860_v0 }
 0x17b   : > { %v1029_v4 = vpop.f32.mrb[8].mxu0 }
 0x17c   : > { %v1033_v6 = vadd.f32 %v1029_v4, %v949_v3  ;;  %v1253_v7 = vpop.f32.mrb[9].mxu0 }
 0x17e   : > { %v1040_v8 = vadd.f32 %v1038_v5, %v1033_v6 }
 0x180   : > { %1041 = vst [vmem:[%s250_s5] sm:$0xff] %v1040_v8 }
 0x181   : > { %1329 = shalt.err (!%p1326_p5)
}
 0x182   : > { %s1330_s14 = scalar_lea.hbm %s1573_s9, 128  ;;  %s1334_s24 = scalar_lea.hbm %s1624_s4, 256 }
 0x183   : > { %p1331_p6 = scmp.ne.s32.totalorder %s1573_s9, %s1330_s14  ;;  %p1335_p10 = scmp.lt.u32.totalorder %s1573_s9, %s1624_s4 }
 0x184   : > { %p1336_p11 = scmp.lt.u32.totalorder %s1334_s24, %s1330_s14  ;;  %p1338_p13 = scmp.lt.u32.totalorder %s1330_s14, %s1573_s9 }
 0x185   : > { %p1332_p7 = pnand %p1331_p6, %p1468_p4 }
 0x186   : > { %p1337_p12 = por %p1336_p11, %p1335_p10 }
 0x187   : > { %p1333_p9 = pneg %p1332_p7 }
 0x188   : > { %p1339_p0 = por %p1338_p13, %p1337_p12 }
 0x18a   : > { %p1340_p1 = pnand %p1339_p0, %p1333_p9 }
 0x18c   : > { %1343 = shalt.err (!%p1340_p1)
}
 0x18d   : > { %1254 = dma.vmem_to_hbm [thread:$0]  (%p1468_p4), %s1575_s6, 128, %s1573_s9, %s1043_s10  }
 0x18e PF: > { %p1260_p2 = scmp.ge.s32.totalorder %s1394_s20, 2  ;;  %s1069_s30 = sand.u32 1, %s1374_s15  }
 0x18f   : > { %s1070_s5 = scalar_lea.sflag [#allocation4], %s1069_s30 }
 0x190   : > { %p1257_p3 = pnand %p1260_p2, %p1475_p8 }
 0x192   : > { %1369 = dma.done.wait (!%p1257_p3), %s1070_s5, 128  }
 0x193   : > { %1371 = vsyncadd (!%p1257_p3), %s1070_s5, 4294967168  ;;  %s17_s20 = sadd.s32 1, %s1394_s20   ;;  %s1627_s15 = smov %s1378_s16 }
 0x194   : > { %p14_p5 = scmp.ge.s32.totalorder %s17_s20, 4   ;;  %s1628_s16 = smov %s1382_s17 }
 0x195   : > { %s1629_s17 = smov %s1481_s28  ;;  %s1630_s18 = smov %s1390_s19 }
 0x196   : > { %s1631_s19 = smov %s1633_s23  ;;  %16 = sbr.rel (!%p14_p5) target bundleno = 4 (0x4), region = 82 }
 0x19d   :  { %1075 = vsyncpa [#allocation4], 1 }
 0x19e   :  { %1077 = vsyncpa [#allocation4 + $0x1], 1 }

</bundles_post_ra>
